<compile_context>
chip_gen: v7x
topology: tpu7x:2x2x1
jax: 0.10.0
libtpu: 0.0.40
codegen_flags: <defaults>
</compile_context>

<pallas_src>
import functools

import jax
import jax.numpy as jnp
from jax.experimental import pallas as pl
from jax.experimental.pallas import tpu as pltpu


# ----------------------------------------------------------------------------
# Kernel: one grid step computes the partial sum of
#     -log_softmax(cls_score_i)[label_i]
# over its tile of rows and writes one f32 scalar to its own output block.
# ----------------------------------------------------------------------------
def _ce_partial_sum_kernel(logits_ref, label_ref, out_ref, *, tile_n, total_n,
                           num_classes):
    i = pl.program_id(0)

    x = logits_ref[...].astype(jnp.float32)                   # (TN, C) f32
    lbl = label_ref[...]                                       # (TN, 1) int32

    # Numerically stable log-sum-exp, working in (x - m) space so the label
    # pick reuses the same shifted values (one fewer add per element).
    m = jnp.max(x, axis=-1, keepdims=True)                     # (TN, 1)
    xm = x - m                                                  # (TN, C)
    sumexp = jnp.sum(jnp.exp(xm), axis=-1, keepdims=True)       # (TN, 1)

    # Pick xm[row, label[row]] via a broadcast compare against a (1, C) iota
    # (avoids materialising a full (TN, C) int32 temp).
    col = jax.lax.broadcasted_iota(jnp.int32, (1, num_classes), 1)
    picked = jnp.sum(jnp.where(col == lbl, xm, 0.0), axis=-1, keepdims=True)

    per_row = jnp.log(sumexp) - picked                          # = lse - x[lbl]

    # Mask (hardware select => NaN/Inf from padded-garbage rows is discarded):
    #   * rows past the true batch (ragged tail of the last block)
    #   * ignored / out-of-range labels (PyTorch ignore_index=-100 semantics)
    row = jax.lax.broadcasted_iota(jnp.int32, (tile_n, 1), 0)
    valid = ((i * tile_n + row) < total_n) & (lbl >= 0) & (lbl < num_classes)
    per_row = jnp.where(valid, per_row, 0.0)

    out_ref[...] = jnp.reshape(jnp.sum(per_row), (1, 1, 1))


# ----------------------------------------------------------------------------
# Per-generation VMEM limit + VMEM-aware tile selection.
# ----------------------------------------------------------------------------
def _detect_vmem_limit_bytes():
    """Conservative scoped-VMEM limit per TPU generation."""
    try:
        kind = jax.devices()[0].device_kind.lower()
    except Exception:
        kind = ""
    if "v7" in kind:
        return 48 * 1024 * 1024     # v7x: 64 MiB physical per TC -> headroom
    if "v" in kind:
        return 100 * 1024 * 1024    # v2..v6: 128 MiB physical VMEM
    return 48 * 1024 * 1024         # unknown backend: be conservative


def _pick_tile_n(n, c, in_itemsize, *, vmem_limit_bytes, block_budget_f32_bytes,
                 buffer_count, min_grid):
    """Largest multiple-of-8 row tile that (a) gives a multi-MiB f32 working
    block, (b) keeps the true per-step footprint inside the VMEM limit, and
    (c) leaves at least `min_grid` grid steps for megacore sharding."""
    # (a) f32 working-block byte budget.
    rows_block = max(1, block_budget_f32_bytes // max(1, c * 4))
    # (b) real per-step footprint: `buffer_count` pipelined copies of the
    #     input block plus ~4 f32-sized temporaries (upcast, exp, selects).
    per_row_bytes = buffer_count * c * in_itemsize + 4 * c * 4
    rows_limit = max(1, int(vmem_limit_bytes * 0.7) // per_row_bytes)

    rows = min(rows_block, rows_limit)
    rows = max(8, (rows // 8) * 8)

    n_padded = ((n + 7) // 8) * 8
    rows = min(rows, n_padded)

    # (c) guarantee cdiv(n, rows) >= min_grid so dimension_semantics=
    #     ("parallel",) can shard across v7x's two TensorCores.
    if min_grid > 1 and n > 8:
        rows_for_grid = max(8, (((n - 1) // (min_grid - 1)) // 8) * 8)
        rows = min(rows, rows_for_grid)
    return int(rows)


# ----------------------------------------------------------------------------
# Wrapper.
# ----------------------------------------------------------------------------
def cross_entropy_loss_pallas(cls_score, label, *, loss_weight=1.0,
                              reduction='mean', tile_n=None, buffer_count=2,
                              block_budget_f32_bytes=None,
                              vmem_limit_bytes=None, min_grid=2):
    """loss = loss_weight * reduce_i( -log_softmax(cls_score_i)[label_i] ).

    Matches the reference module's default path (plain cross_entropy,
    weight=None, class_weight=None, avg_factor=None).  reduction in
    {'mean', 'sum'}.  cls_score may be float32 or bfloat16 (kept narrow in
    HBM; the kernel upcasts per tile).
    """
    if reduction not in ('mean', 'sum'):
        # TODO(synk): reduction='none', per-sample weight and avg_factor paths.
        raise NotImplementedError("only reduction in {'mean','sum'} is supported")

    N, C = cls_score.shape
    in_itemsize = jnp.dtype(cls_score.dtype).itemsize

    if vmem_limit_bytes is None:
        vmem_limit_bytes = _detect_vmem_limit_bytes()
    if block_budget_f32_bytes is None:
        # Multi-MiB blocks amortise the ~0.35 us per-grid-step overhead and
        # keep the HBM pipe full; smaller default on v7x (64 MiB VMEM).
        block_budget_f32_bytes = (8 if vmem_limit_bytes > 64 * 1024 * 1024
                                  else 4) * 1024 * 1024
    if tile_n is None:
        tile_n = _pick_tile_n(N, C, in_itemsize,
                              vmem_limit_bytes=vmem_limit_bytes,
                              block_budget_f32_bytes=block_budget_f32_bytes,
                              buffer_count=buffer_count, min_grid=min_grid)
    grid_n = pl.cdiv(N, tile_n)

    label2d = label.astype(jnp.int32).reshape(N, 1)

    kernel = functools.partial(_ce_partial_sum_kernel, tile_n=tile_n,
                               total_n=N, num_classes=C)

    cost = pl.CostEstimate(
        flops=6 * N * C,
        transcendentals=N * C + N,
        bytes_accessed=N * C * in_itemsize + N * 4 + grid_n * 4,
    )

    logits_spec_kwargs = {}
    if buffer_count != 2:
        # Deeper input pipelining (e.g. 3 buffers on v5e/v6e once blocks are
        # large); the default 2-deep path is untouched.
        logits_spec_kwargs = dict(pipeline_mode=pl.Buffered(buffer_count))

    partial = pl.pallas_call(
        kernel,
        out_shape=jax.ShapeDtypeStruct((grid_n, 1, 1), jnp.float32),
        grid_spec=pltpu.PrefetchScalarGridSpec(
            num_scalar_prefetch=0,
            grid=(grid_n,),
            in_specs=[
                pl.BlockSpec((tile_n, C), lambda i: (i, 0),
                             **logits_spec_kwargs),            # logits tile
                pl.BlockSpec((tile_n, 1), lambda i: (i, 0)),    # label tile
            ],
            out_specs=pl.BlockSpec((1, 1, 1), lambda i: (i, 0, 0)),
        ),
        compiler_params=pltpu.CompilerParams(
            dimension_semantics=("parallel",),      # megacore can split grid
            vmem_limit_bytes=vmem_limit_bytes,
        ),
        cost_estimate=cost,
    )(cls_score, label2d)

    total = jnp.sum(partial[:, 0, 0])
    if reduction == 'mean':
        # NOTE: denominator is N (including ignored rows) — this matches
        # F.cross_entropy(reduction='none') followed by .mean() as in the
        # reference module, NOT torch CE's reduction='mean' with ignore_index.
        total = total / N
    return loss_weight * total


# ----------------------------------------------------------------------------
# Pure-JAX reference mirroring F.cross_entropy(reduction='none') + mean/sum.
# ----------------------------------------------------------------------------
def _reference_loss(cls_score, label, loss_weight=1.0, reduction='mean'):
    N, C = cls_score.shape
    logp = jax.nn.log_softmax(cls_score.astype(jnp.float32), axis=-1)
    safe = jnp.clip(label.astype(jnp.int32), 0, C - 1)
    gathered = -jnp.take_along_axis(logp, safe[:, None], axis=-1)[:, 0]
    valid = (label >= 0) & (label < C)
    per_row = jnp.where(valid, gathered, 0.0)
    red = jnp.mean(per_row) if reduction == 'mean' else jnp.sum(per_row)
    return loss_weight * red


if __name__ == "__main__":
    key = jax.random.PRNGKey(0)
    k1, k2, k3, k4, k5, k6 = jax.random.split(key, 6)

    # --- Test 1: basic f32, batch multiple of 8 ---
    N, C = 8, 32
    cls_score = jax.random.normal(k1, (N, C), dtype=jnp.float32)
    label = jax.random.randint(k2, (N,), 0, C, dtype=jnp.int32)

    loss = jax.block_until_ready(cross_entropy_loss_pallas(cls_score, label))
    ref = _reference_loss(cls_score, label)
    assert jnp.allclose(loss, ref, atol=1e-5, rtol=1e-5), (loss, ref)

    # --- Test 2: ragged batch + ignore_index (-100) label ---
    N2 = 12
    cls2 = jax.random.normal(k3, (N2, C), dtype=jnp.float32)
    lbl2 = jax.random.randint(k4, (N2,), 0, C, dtype=jnp.int32)
    lbl2 = lbl2.at[3].set(-100)          # ignored row: 0 loss, still counted in N
    loss2 = jax.block_until_ready(cross_entropy_loss_pallas(cls2, lbl2))
    ref2 = _reference_loss(cls2, lbl2)
    assert jnp.allclose(loss2, ref2, atol=1e-5, rtol=1e-5), (loss2, ref2)

    # --- Test 3: bf16 logits stay bf16 in HBM (kernel upcasts per tile) ---
    cls_bf16 = cls_score.astype(jnp.bfloat16)
    loss3 = jax.block_until_ready(cross_entropy_loss_pallas(cls_bf16, label))
    ref3 = _reference_loss(cls_bf16.astype(jnp.float32), label)
    assert jnp.allclose(loss3, ref3, atol=1e-5, rtol=1e-5), (loss3, ref3)

    # --- Test 4: force a multi-step grid (tile_n=8, N=24 -> grid_n=3), 'sum' ---
    N4 = 24
    cls4 = jax.random.normal(k5, (N4, C), dtype=jnp.float32)
    lbl4 = jax.random.randint(k6, (N4,), 0, C, dtype=jnp.int32)
    loss4 = jax.block_until_ready(
        cross_entropy_loss_pallas(cls4, lbl4, reduction='sum', tile_n=8))
    ref4 = _reference_loss(cls4, lbl4, reduction='sum')
    assert jnp.allclose(loss4, ref4, atol=1e-4, rtol=1e-5), (loss4, ref4)

    print("KERNEL_OK")
</pallas_src>

<mosaic_0001>
module attributes {stable_mosaic.version = 11 : i64} {
  func.func @_ce_partial_sum_kernel(%arg0: i32, %arg1: memref<8x32xf32, #tpu.memory_space<vmem>>, %arg2: memref<8x1xi32, #tpu.memory_space<vmem>>, %arg3: memref<1x1x1xf32, #tpu.memory_space<vmem>>) attributes {dimension_semantics = [#tpu.dimension_semantics<parallel>], iteration_bounds = array<i64: 1>, scalar_prefetch = 0 : i64, scratch_operands = 0 : i64, tpu.core_type = #tpu.core_type<tc>, window_params = [{transform_indices = @transform_0, window_bounds = array<i64: 8, 32>}, {transform_indices = @transform_1, window_bounds = array<i64: 8, 1>}, {transform_indices = @transform_2, window_bounds = array<i64: 1, 1, 1>}]} {
    %c0 = arith.constant 0 : index
    %c0_0 = arith.constant 0 : index
    %0 = vector.load %arg1[%c0, %c0_0] : memref<8x32xf32, #tpu.memory_space<vmem>>, vector<8x32xf32>
    %c0_1 = arith.constant 0 : index
    %c0_2 = arith.constant 0 : index
    %1 = vector.load %arg2[%c0_1, %c0_2] : memref<8x1xi32, #tpu.memory_space<vmem>>, vector<8x1xi32>
    %cst = arith.constant dense<0xFF800000> : vector<8xf32>
    %2 = vector.multi_reduction <maximumf>, %0, %cst [1] : vector<8x32xf32> to vector<8xf32>
    %3 = vector.shape_cast %2 : vector<8xf32> to vector<8x1xf32>
    %4 = vector.broadcast %3 : vector<8x1xf32> to vector<8x32xf32>
    %5 = arith.subf %0, %4 : vector<8x32xf32>
    %6 = math.exp %5 : vector<8x32xf32>
    %cst_3 = arith.constant dense<0.000000e+00> : vector<8xf32>
    %7 = vector.multi_reduction <add>, %6, %cst_3 [1] : vector<8x32xf32> to vector<8xf32>
    %8 = vector.shape_cast %7 : vector<8xf32> to vector<8x1xf32>
    %9 = tpu.iota {dimensions = array<i32: 1>} : vector<1x32xi32>
    %10 = vector.broadcast %9 : vector<1x32xi32> to vector<8x32xi32>
    %11 = vector.broadcast %1 : vector<8x1xi32> to vector<8x32xi32>
    %12 = arith.cmpi eq, %10, %11 : vector<8x32xi32>
    %cst_4 = arith.constant 0.000000e+00 : f32
    %13 = vector.broadcast %cst_4 : f32 to vector<8x32xf32>
    %14 = arith.select %12, %5, %13 : vector<8x32xi1>, vector<8x32xf32>
    %cst_5 = arith.constant dense<0.000000e+00> : vector<8xf32>
    %15 = vector.multi_reduction <add>, %14, %cst_5 [1] : vector<8x32xf32> to vector<8xf32>
    %16 = vector.shape_cast %15 : vector<8xf32> to vector<8x1xf32>
    %17 = math.log %8 : vector<8x1xf32>
    %18 = arith.subf %17, %16 : vector<8x1xf32>
    %19 = tpu.iota {dimensions = array<i32: 0>} : vector<8x1xi32>
    %c8_i32 = arith.constant 8 : i32
    %20 = arith.muli %arg0, %c8_i32 : i32
    %21 = vector.broadcast %20 : i32 to vector<8x1xi32>
    %22 = arith.addi %21, %19 : vector<8x1xi32>
    %c8_i32_6 = arith.constant 8 : i32
    %23 = vector.broadcast %c8_i32_6 : i32 to vector<8x1xi32>
    %24 = arith.cmpi slt, %22, %23 : vector<8x1xi32>
    %c0_i32 = arith.constant 0 : i32
    %25 = vector.broadcast %c0_i32 : i32 to vector<8x1xi32>
    %26 = arith.cmpi sge, %1, %25 : vector<8x1xi32>
    %27 = arith.andi %24, %26 : vector<8x1xi1>
    %c32_i32 = arith.constant 32 : i32
    %28 = vector.broadcast %c32_i32 : i32 to vector<8x1xi32>
    %29 = arith.cmpi slt, %1, %28 : vector<8x1xi32>
    %30 = arith.andi %27, %29 : vector<8x1xi1>
    %cst_7 = arith.constant 0.000000e+00 : f32
    %31 = vector.broadcast %cst_7 : f32 to vector<8x1xf32>
    %32 = arith.select %30, %18, %31 : vector<8x1xi1>, vector<8x1xf32>
    %33 = vector.shape_cast %32 : vector<8x1xf32> to vector<1x8x1xf32>
    %cst_8 = arith.constant dense<0.000000e+00> : vector<1xf32>
    %34 = vector.multi_reduction <add>, %33, %cst_8 [1, 2] : vector<1x8x1xf32> to vector<1xf32>
    %35 = vector.shape_cast %34 : vector<1xf32> to vector<1x1x1xf32>
    %36 = vector.extract %35[0, 0, 0] : f32 from vector<1x1x1xf32>
    %37 = vector.broadcast %36 : f32 to vector<1x1x1xf32>
    %c0_9 = arith.constant 0 : index
    %c0_10 = arith.constant 0 : index
    %c0_11 = arith.constant 0 : index
    %38 = vector.load %arg3[%c0_9, %c0_10, %c0_11] : memref<1x1x1xf32, #tpu.memory_space<vmem>>, vector<1x1x1xf32>
    tpu.vector_store %arg3[%c0_9, %c0_10, %c0_11], %37 {strides = array<i32>} : memref<1x1x1xf32, #tpu.memory_space<vmem>>, vector<1x1x1xf32>,
    return
  }
  func.func @transform_0(%arg0: i32) -> (i32, i32) {
    %c0_i32 = arith.constant 0 : i32
    %c0_i32_0 = arith.constant 0 : i32
    return %arg0, %c0_i32 : i32, i32
  }
  func.func @transform_1(%arg0: i32) -> (i32, i32) {
    %c0_i32 = arith.constant 0 : i32
    %c0_i32_0 = arith.constant 0 : i32
    return %arg0, %c0_i32 : i32, i32
  }
  func.func @transform_2(%arg0: i32) -> (i32, i32, i32) {
    %c0_i32 = arith.constant 0 : i32
    %c0_i32_0 = arith.constant 0 : i32
    %c0_i32_1 = arith.constant 0 : i32
    return %arg0, %c0_i32, %c0_i32_0 : i32, i32, i32
  }
}

</mosaic_0001>

<bundles_post_ra>
// kernel: tpu_custom_call.1
= control target key start
LH: loop header
LB: loop body
LE: loop exit
PB: predicated region body
PF: predicated region fallthrough
CT: control target
= control target key end

     0   :  { %vm14_vm0 = vcmask 261120   ;;  %s147_s0 = inlined_call_operand.vmem [shape: f32[8,32], index: 0, kind: input, shape index: {}]   ;;  %s148_s1 = inlined_call_operand.vmem [shape: s32[8,1], index: 1, kind: input, shape index: {}]   ;;  %s149_s2 = inlined_call_operand.hbm [shape: f32[1,1,1], index: 2, kind: output, shape index: {}]  }
   0x1   :  { %v12_v0 = vld [vmem:[%s147_s0] sm:$0xff] }
   0x2   :  { %7 = vsyncpa [#allocation3], 0  ;;  %v15_v1 = vsel %vm14_vm0, %v12_v0, -inf  ;;  %v109_v2 = vmov 0   ;;  %v13_v3 = vld [vmem:[%s148_s1] sm:$0xff]  ;;  %v24_v7 = vlaneseq  ;;  %vm48_vm5 = vcmask 7168  }
   0x3   :  { %80 = vset.pattern.permute.xlu0 %v109_v2  ;;  %vm43_vm2 = vcmp.ge.s32.totalorder %v13_v3, 0  ;;  %vm45_vm3 = vcmp.lt.s32.totalorder %v13_v3, 32  ;;  %s110_s0 = smov [#allocation2]   ;;  %vm60_vm6 = vcmask 0  }
   0x4   :  { %16 = vmax.xlane.f32.xlu0 %v15_v1  ;;  %v25_v8 = vand.u32 127, %v24_v7  ;;  %vm46_vm4 = vmand %vm43_vm2, %vm45_vm3  ;;  %s68_s1 = sshll.u32 %s110_s0, 4  ;;  %s69_s1 = int_to_ptr.vmem [resolvable:$true] %s68_s1 }
   0x5   :  { %s85_s14 = scalar_lea.vmem %s69_s1, 16  ;;  %s89_s15 = scalar_lea.vmem %s69_s1, 32 }
   0x6   :  { %p86_p0 = scmp.ne.s32.totalorder %s69_s1, %s85_s14  ;;  %p90_p1 = scmp.lt.s32.totalorder %s69_s1, %s69_s1 }
   0x7   :  { %p91_p2 = scmp.lt.s32.totalorder %s89_s15, %s85_s14 }
   0x9   :  { %p92_p3 = por %p91_p2, %p90_p1 }
   0xb   :  { %p93_p4 = pnand %p92_p3, %p86_p0 }
  0x1a   :  { %27 = vperm.xlu0 %80, %v13_v3  }
  0x91   :  { %v17_v4 = vpop.xlane.xlu0 %16 }
  0x92   :  { %v18_v5 = vsub.f32 %v12_v0, %v17_v4 }
  0x94   :  { %v19_v6 = vmul.f32 1.442695, %v18_v5 }
  0x96   :  { %81 = vpow2.f32 %v19_v6 }
  0x99   :  { %v28_v9 = vpop.permute.xlu0 %27 }
  0x9a   :  { %vm29_vm1 = vcmp.eq.s32.totalorder %v25_v8, %v28_v9 }
  0x9b   :  { %v30_v12 = vsel %vm29_vm1, %v18_v5, 0.0 }
  0x9c   :  { %v31_v13 = vsel %vm14_vm0, %v30_v12, 0.0 }
  0xa0   :  { %v82_v10 = vpop.eup %81 }
  0xa1   :  { %v21_v11 = vsel %vm14_vm0, %v82_v10, 0.0 }
  0xa2   :  { %22 = vadd.xlane.f32.xlu1 %v21_v11 }
  0xa6   :  { %32 = vadd.xlane.f32.xlu1 %v31_v13 }
 0x12f   :  { %v23_v14 = vpop.xlane.xlu1 %22 }
 0x130   :  { %83 = vlog2.f32 %v23_v14 }
 0x133   :  { %v33_v17 = vpop.xlane.xlu1 %32 }
 0x13a   :  { %v84_v15 = vpop.eup %83 }
 0x13b   :  { %v35_v16 = vmul.f32 0.6931472, %v84_v15 }
 0x13d   :  { %v36_v18 = vsub.f32 %v35_v16, %v33_v17 }
 0x13f   :  { %v47_v19 = vsel %vm46_vm4, %v36_v18, 0.0 }
 0x140   :  { %v49_v20 = vsel %vm48_vm5, %v47_v19, 0.0 }
 0x141   :  { %50 = vadd.xlane.f32.xlu1 %v49_v20 }
 0x1ce   :  { %v51_v21 = vpop.xlane.xlu1 %50 }
 0x1cf   :  { %v52_v22 = vrot.slane %v51_v21, 4 }
 0x1d1   :  { %v53_v23 = vadd.f32 %v52_v22, %v51_v21 }
 0x1d3   :  { %v54_v24 = vrot.slane %v53_v23, 2 }
 0x1d5   :  { %v55_v25 = vadd.f32 %v54_v24, %v53_v23 }
 0x1d7   :  { %v56_v26 = vrot.slane %v55_v25, 1 }
 0x1d9   :  { %v57_v27 = vadd.f32 %v56_v26, %v55_v25 }
 0x1db   :  { %76 = vpush %v57_v27 }
 0x20c   :  { %s77_s13 = spop %76 }
 0x20d   :  { %v59_v28 = vstv %s77_s13 }
 0x20e   :  { %61 = vst.msk [vmem:[#allocation2] sm:$0x1] %vm60_vm6, %v59_v28 }
 0x20f   :  { %96 = shalt.err (!%p93_p4)
}
 0x210   :  { %s97_s18 = scalar_lea.hbm %s149_s2, 16 }
 0x211   :  { %p98_p5 = scmp.ne.s32.totalorder %s149_s2, %s97_s18  ;;  %p101_p6 = scmp.lt.u32.totalorder %s97_s18, %s149_s2 }
 0x213   :  { %p103_p7 = pnand %p101_p6, %p98_p5 }
 0x215   :  { %106 = shalt.err (!%p103_p7)
}
 0x216   :  { %71 = dma.vmem_to_hbm [thread:$0]  %s69_s1, 16, %s149_s2, [#allocation3]  }
 0x217   :  { %107 = dma.done.wait [#allocation3], 16  }
 0x218   :  { %108 = vsyncadd [#allocation3], 4294967280 }
 0x219   :  { %75 = vsyncpa [#allocation3], 1 }

</bundles_post_ra>
